<compile_context>
chip_gen: v7x
topology: tpu7x:2x2x1
jax: 0.10.0
libtpu: 0.0.40
codegen_flags: <defaults>
</compile_context>

<pallas_src>
import functools

import jax
import jax.numpy as jnp
from jax import lax
from jax.experimental import pallas as pl
from jax.experimental.pallas import tpu as pltpu

EPS = 1e-5
_LANE = 128


def _round_up(v, m):
    return ((v + m - 1) // m) * m


def _cparams(*sem):
    # Explicit (modest) VMEM budget so tile choices stay valid on v7x (64 MiB
    # physical) as well as v5e/v6e; blocks here are far below the limit.
    return pltpu.CompilerParams(dimension_semantics=tuple(sem),
                                vmem_limit_bytes=32 * 1024 * 1024)


# --------------------------------------------------------------------------- #
# Kernels
# --------------------------------------------------------------------------- #
def _mm_stats_kernel(x_ref, w_ref, y_ref, s_ref, ss_ref):
    """1x1 conv as matmul (bf16 in, f32 out) + per-channel sum / sum-of-squares."""
    @pl.when(pl.program_id(0) == 0)
    def _init():
        s_ref[...] = jnp.zeros_like(s_ref)
        ss_ref[...] = jnp.zeros_like(ss_ref)

    y = jnp.dot(x_ref[...], w_ref[...], preferred_element_type=jnp.float32)
    y_ref[...] = y
    # Single-pass stats; sublane reduce is cheap at these tile sizes (could be
    # swapped for an MXU ones-row matmul if the XLU ever becomes the bottleneck).
    s_ref[...] += jnp.sum(y, axis=0, keepdims=True)
    ss_ref[...] += jnp.sum(y * y, axis=0, keepdims=True)


def _conv3x3_stats_kernel(x_ref, w_ref, m_ref, y_ref, s_ref, ss_ref, *,
                          offsets, pout):
    """3x3 conv = 9 shifted in-VMEM matmuls accumulated in f32, + masked stats.

    x_ref : (1, R, C)  flattened, halo-padded per-sample slab (bf16)
    w_ref : (9, C, Co) per-tap weights (bf16)
    m_ref : (Pout, 1)  interior mask (1 on real output pixels, 0 on the ring)
    y_ref : (1, Pout, Co) pre-BN conv output on the padded grid (f32)
    """
    @pl.when(pl.program_id(0) == 0)
    def _init():
        s_ref[...] = jnp.zeros_like(s_ref)
        ss_ref[...] = jnp.zeros_like(ss_ref)

    x = x_ref[0]                                    # (R, C)
    co = w_ref.shape[2]
    acc = jnp.zeros((pout, co), jnp.float32)
    for t, off in enumerate(offsets):               # 9 static taps, unrolled
        acc = acc + jnp.dot(x[off:off + pout, :], w_ref[t],
                            preferred_element_type=jnp.float32)
    y_ref[0] = acc

    masked = acc * m_ref[...]                       # zero out the padded ring
    s_ref[...] += jnp.sum(masked, axis=0, keepdims=True)
    ss_ref[...] += jnp.sum(masked * acc, axis=0, keepdims=True)


def _bn_relu_kernel(y_ref, s_ref, ss_ref, g_ref, b_ref, m_ref, o_ref, *,
                    inv_count):
    """Train-mode BN (from accumulated stats) + affine + ReLU (+ row mask)."""
    mean = s_ref[...] * inv_count
    var = jnp.maximum(ss_ref[...] * inv_count - mean * mean, 0.0)
    scale = g_ref[...] * lax.rsqrt(var + EPS)
    shift = b_ref[...] - mean * scale
    y = jnp.maximum(y_ref[...] * scale + shift, 0.0)
    o_ref[...] = (y * m_ref[...]).astype(o_ref.dtype)


def _bn_relu_res_kernel(y_ref, s_ref, ss_ref, g_ref, b_ref, r_ref, o_ref, *,
                        inv_count):
    """Final stage: BN + affine + ReLU + broadcast residual add (per sample)."""
    mean = s_ref[...] * inv_count
    var = jnp.maximum(ss_ref[...] * inv_count - mean * mean, 0.0)
    scale = g_ref[...] * lax.rsqrt(var + EPS)
    shift = b_ref[...] - mean * scale
    y = jnp.maximum(y_ref[0] * scale + shift, 0.0)   # (S, C)
    o_ref[0] = (y + r_ref[0]).astype(o_ref.dtype)    # (1, C) identity broadcast


# --------------------------------------------------------------------------- #
# pallas_call wrappers
# --------------------------------------------------------------------------- #
def _conv1x1_stats(x, w, tp):
    pp, ci = x.shape
    co = w.shape[1]
    nt = pp // tp
    return pl.pallas_call(
        _mm_stats_kernel,
        grid=(nt,),
        in_specs=[pl.BlockSpec((tp, ci), lambda i: (i, 0)),
                  pl.BlockSpec((ci, co), lambda i: (0, 0))],
        out_specs=[pl.BlockSpec((tp, co), lambda i: (i, 0)),
                   pl.BlockSpec((1, co), lambda i: (0, 0)),
                   pl.BlockSpec((1, co), lambda i: (0, 0))],
        out_shape=[jax.ShapeDtypeStruct((pp, co), jnp.float32),
                   jax.ShapeDtypeStruct((1, co), jnp.float32),
                   jax.ShapeDtypeStruct((1, co), jnp.float32)],
        compiler_params=_cparams("arbitrary"),   # stats accumulate across tiles
    )(x, w)


def _conv3x3_stats(slab, w_taps, mask_col, offsets, pout):
    n, r, c = slab.shape
    co = w_taps.shape[2]
    kern = functools.partial(_conv3x3_stats_kernel, offsets=offsets, pout=pout)
    return pl.pallas_call(
        kern,
        grid=(n,),
        in_specs=[pl.BlockSpec((1, r, c), lambda i: (i, 0, 0)),
                  pl.BlockSpec((9, c, co), lambda i: (0, 0, 0)),
                  pl.BlockSpec((pout, 1), lambda i: (0, 0))],
        out_specs=[pl.BlockSpec((1, pout, co), lambda i: (i, 0, 0)),
                   pl.BlockSpec((1, co), lambda i: (0, 0)),
                   pl.BlockSpec((1, co), lambda i: (0, 0))],
        out_shape=[jax.ShapeDtypeStruct((n, pout, co), jnp.float32),
                   jax.ShapeDtypeStruct((1, co), jnp.float32),
                   jax.ShapeDtypeStruct((1, co), jnp.float32)],
        compiler_params=_cparams("arbitrary"),
    )(slab, w_taps, mask_col)


def _bn_relu(y, s, ss, g, b, mask_rows, count, tp, out_dtype):
    pp, c = y.shape
    nt = pp // tp
    kern = functools.partial(_bn_relu_kernel, inv_count=1.0 / count)
    return pl.pallas_call(
        kern,
        grid=(nt,),
        in_specs=[pl.BlockSpec((tp, c), lambda i: (i, 0)),
                  pl.BlockSpec((1, c), lambda i: (0, 0)),
                  pl.BlockSpec((1, c), lambda i: (0, 0)),
                  pl.BlockSpec((1, c), lambda i: (0, 0)),
                  pl.BlockSpec((1, c), lambda i: (0, 0)),
                  pl.BlockSpec((tp, 1), lambda i: (i, 0))],
        out_specs=pl.BlockSpec((tp, c), lambda i: (i, 0)),
        out_shape=jax.ShapeDtypeStruct((pp, c), out_dtype),
        compiler_params=_cparams("parallel"),    # tiles independent (v7x 2 TCs)
    )(y, s, ss, g, b, mask_rows)


def _bn_relu_res(y3d, s, ss, g, b, ident, count):
    n, sp, c = y3d.shape
    kern = functools.partial(_bn_relu_res_kernel, inv_count=1.0 / count)
    return pl.pallas_call(
        kern,
        grid=(n,),
        in_specs=[pl.BlockSpec((1, sp, c), lambda i: (i, 0, 0)),
                  pl.BlockSpec((1, c), lambda i: (0, 0)),
                  pl.BlockSpec((1, c), lambda i: (0, 0)),
                  pl.BlockSpec((1, c), lambda i: (0, 0)),
                  pl.BlockSpec((1, c), lambda i: (0, 0)),
                  pl.BlockSpec((1, 1, c), lambda i: (i, 0, 0))],
        out_specs=pl.BlockSpec((1, sp, c), lambda i: (i, 0, 0)),
        out_shape=jax.ShapeDtypeStruct((n, sp, c), jnp.float32),
        compiler_params=_cparams("parallel"),
    )(y3d, s, ss, g, b, ident)


# --------------------------------------------------------------------------- #
# ResBlock50 forward
# --------------------------------------------------------------------------- #
def res_block50(x_nchw, p, *, tp=128, compute_dtype=jnp.bfloat16):
    """Forward pass of ResBlock50. x_nchw: (N, Cin, H, W); p: torch-layout params."""
    n, cin, h, w = x_nchw.shape
    mid = p["w1"].shape[0]
    cout = p["w3"].shape[0]
    if not (h == 1 and w == 1 and cin == cout):
        # Exactly the PyTorch module's constraint: because the 1x1 convs use
        # padding=1 the block output is (H+4, W+4), so `x + identity` only
        # broadcasts when H == W == 1 and in_channels == out_channels.
        raise NotImplementedError("residual broadcast requires H == W == 1 and Cin == Cout")

    f32 = jnp.float32
    ci = _round_up(cin, _LANE)
    cm = _round_up(mid, _LANE)
    co = _round_up(cout, _LANE)

    h1, w1 = h + 2, w + 2            # spatial after conv_1x1a / conv_3x3
    h2, w2 = h + 4, w + 4            # spatial after conv_1x1b (final output)
    s1, s2 = h1 * w1, h2 * w2
    p1, p3 = n * s1, n * s2
    p1p, p3p = _round_up(p1, tp), _round_up(p3, tp)

    # ---- weights: torch OIHW -> lane-padded matmul layout, bf16 for the MXU --
    w1m = jnp.zeros((ci, cm), f32).at[:cin, :mid].set(
        jnp.transpose(p["w1"][:, :, 0, 0], (1, 0))).astype(compute_dtype)
    w3m = jnp.zeros((cm, co), f32).at[:mid, :cout].set(
        jnp.transpose(p["w3"][:, :, 0, 0], (1, 0))).astype(compute_dtype)
    w2m = jnp.zeros((9, cm, cm), f32).at[:, :mid, :mid].set(
        jnp.transpose(p["w2"], (2, 3, 1, 0)).reshape(9, mid, mid)).astype(compute_dtype)

    def vec(v, c):
        return jnp.zeros((1, c), f32).at[0, :v.shape[0]].set(v)

    g1, b1 = vec(p["g1"], cm), vec(p["b1"], cm)
    g2, b2 = vec(p["g2"], cm), vec(p["b2"], cm)
    g3, b3 = vec(p["g3"], co), vec(p["b3"], co)

    # ---- stage 1: 1x1 conv (padding=1) + BN + ReLU --------------------------
    x = jnp.transpose(x_nchw, (0, 2, 3, 1))                      # NHWC
    xp = jnp.pad(x, ((0, 0), (1, 1), (1, 1), (0, ci - cin)))     # spatial + lane pad
    x1 = jnp.pad(xp.reshape(p1, ci), ((0, p1p - p1), (0, 0))).astype(compute_dtype)

    y1, s1sum, s1sq = _conv1x1_stats(x1, w1m, tp)
    ones1 = jnp.ones((p1p, 1), f32)
    a1 = _bn_relu(y1, s1sum, s1sq, g1, b1, ones1, p1, tp, compute_dtype)

    # ---- stage 2: 3x3 conv (padding=1) + BN + ReLU --------------------------
    # Build a per-sample, spatially zero-padded, flattened slab with a flat
    # halo so each of the 9 taps is a contiguous row-shift inside the kernel.
    a1sp = a1[:p1].reshape(n, h1, w1, cm)
    a1pad = jnp.pad(a1sp, ((0, 0), (1, 1), (1, 1), (0, 0)))      # (n, h2, w2, cm)
    halo = w2 + 1
    slab = jnp.pad(a1pad.reshape(n, s2, cm), ((0, 0), (halo, halo), (0, 0)))
    offsets = tuple(halo + (i - 1) * w2 + (j - 1) for i in range(3) for j in range(3))

    m2d = jnp.zeros((h2, w2), f32).at[1:h2 - 1, 1:w2 - 1].set(1.0)  # interior mask
    mask_col = m2d.reshape(s2, 1)

    y2, s2sum, s2sq = _conv3x3_stats(slab, w2m, mask_col, offsets, s2)

    # Normalize + ReLU; the mask zeroes the padded ring (and the row padding),
    # so the result is directly stage-3's zero-padded input layout.
    y2f = jnp.pad(y2.reshape(p3, cm), ((0, p3p - p3), (0, 0)))
    mrows = jnp.pad(jnp.tile(m2d.reshape(s2, 1), (n, 1)), ((0, p3p - p3), (0, 0)))
    a2 = _bn_relu(y2f, s2sum, s2sq, g2, b2, mrows, n * s1, tp, compute_dtype)

    # ---- stage 3: 1x1 conv (padding=1) + BN + ReLU + residual ---------------
    y3, s3sum, s3sq = _conv1x1_stats(a2, w3m, tp)
    ident = jnp.zeros((n, 1, co), f32).at[:, 0, :cout].set(x_nchw[:, :, 0, 0])
    out3 = _bn_relu_res(y3[:p3].reshape(n, s2, co), s3sum, s3sq, g3, b3, ident, p3)

    out = out3.reshape(n, h2, w2, co)[:, :, :, :cout]
    return jnp.transpose(out, (0, 3, 1, 2))                      # back to NCHW


# --------------------------------------------------------------------------- #
# deterministic parameter init + pure-JAX references
# --------------------------------------------------------------------------- #
def init_params(key, in_channels, middle_channels, out_channels):
    ks = jax.random.split(key, 9)
    return {
        "w1": 0.1 * jax.random.normal(ks[0], (middle_channels, in_channels, 1, 1), jnp.float32),
        "w2": 0.1 * jax.random.normal(ks[1], (middle_channels, middle_channels, 3, 3), jnp.float32),
        "w3": 0.1 * jax.random.normal(ks[2], (out_channels, middle_channels, 1, 1), jnp.float32),
        "g1": 1.0 + 0.1 * jax.random.normal(ks[3], (middle_channels,), jnp.float32),
        "b1": 0.1 * jax.random.normal(ks[4], (middle_channels,), jnp.float32),
        "g2": 1.0 + 0.1 * jax.random.normal(ks[5], (middle_channels,), jnp.float32),
        "b2": 0.1 * jax.random.normal(ks[6], (middle_channels,), jnp.float32),
        "g3": 1.0 + 0.1 * jax.random.normal(ks[7], (out_channels,), jnp.float32),
        "b3": 0.1 * jax.random.normal(ks[8], (out_channels,), jnp.float32),
    }


def _reference(x, p, conv_dtype=jnp.float32):
    """Pure-JAX ResBlock50 (training-mode BN). conv_dtype=bf16 matches the MXU path."""
    def conv_block(x, wgt, g, b):
        y = lax.conv_general_dilated(
            x.astype(conv_dtype), wgt.astype(conv_dtype),
            window_strides=(1, 1), padding=[(1, 1), (1, 1)],
            dimension_numbers=("NCHW", "OIHW", "NCHW"),
            preferred_element_type=jnp.float32,
            precision=lax.Precision.HIGHEST)
        mean = jnp.mean(y, axis=(0, 2, 3), keepdims=True)
        var = jnp.mean(jnp.square(y - mean), axis=(0, 2, 3), keepdims=True)
        y = (y - mean) * lax.rsqrt(var + EPS)
        y = y * g.reshape(1, -1, 1, 1) + b.reshape(1, -1, 1, 1)
        return jnp.maximum(y, 0.0)

    identity = x
    y = conv_block(x, p["w1"], p["g1"], p["b1"])
    y = conv_block(y, p["w2"], p["g2"], p["b2"])
    y = conv_block(y, p["w3"], p["g3"], p["b3"])
    return y + identity


if __name__ == "__main__":
    key = jax.random.PRNGKey(0)
    kx, kp = jax.random.split(key)

    # The module's residual add only broadcasts for H == W == 1 and Cin == Cout
    # (its 1x1 convs use padding=1, growing spatial dims to H+4, W+4).
    n, cin, h, w = 8, 16, 1, 1
    mid, cout = 8, 16

    x = jax.random.normal(kx, (n, cin, h, w), jnp.float32)
    params = init_params(kp, cin, mid, cout)

    out = jax.block_until_ready(res_block50(x, params, tp=64))
    assert out.shape == (n, cout, h + 4, w + 4), out.shape

    ref_exact = jax.block_until_ready(_reference(x, params))
    ref_matched = jax.block_until_ready(_reference(x, params, conv_dtype=jnp.bfloat16))

    # Tight structural check vs. a precision-matched (bf16-MXU) reference.
    err_matched = float(jnp.max(jnp.abs(out - ref_matched)))
    # Loose sanity check vs. the exact f32 module semantics (bf16 rounding).
    err_exact = float(jnp.max(jnp.abs(out - ref_exact)))
    scale = float(jnp.max(jnp.abs(ref_exact))) + 1e-6

    assert err_matched < 3e-2, ("mismatch vs bf16-matched reference", err_matched)
    assert err_exact / scale < 0.1, ("mismatch vs f32 reference", err_exact, scale)

    print("KERNEL_OK")
</pallas_src>

<mosaic_0001>
module attributes {stable_mosaic.version = 11 : i64} {
  func.func @_mm_stats_kernel(%arg0: i32, %arg1: memref<64x128xbf16, #tpu.memory_space<vmem>>, %arg2: memref<128x128xbf16, #tpu.memory_space<vmem>>, %arg3: memref<64x128xf32, #tpu.memory_space<vmem>>, %arg4: memref<1x128xf32, #tpu.memory_space<vmem>>, %arg5: memref<1x128xf32, #tpu.memory_space<vmem>>) attributes {dimension_semantics = [#tpu.dimension_semantics<arbitrary>], iteration_bounds = array<i64: 2>, scalar_prefetch = 0 : i64, scratch_operands = 0 : i64, tpu.core_type = #tpu.core_type<tc>, window_params = [{transform_indices = @transform_0, window_bounds = array<i64: 64, 128>}, {pipeline_mode = #tpu.pipeline_mode<synchronous>, transform_indices = @transform_1, window_bounds = array<i64: 128, 128>}, {transform_indices = @transform_2, window_bounds = array<i64: 64, 128>}, {pipeline_mode = #tpu.pipeline_mode<synchronous>, transform_indices = @transform_3, window_bounds = array<i64: 1, 128>}, {pipeline_mode = #tpu.pipeline_mode<synchronous>, transform_indices = @transform_4, window_bounds = array<i64: 1, 128>}]} {
    %c0_i32 = arith.constant 0 : i32
    %0 = arith.cmpi eq, %arg0, %c0_i32 : i32
    %1 = arith.extui %0 : i1 to i32
    %c0_i32_0 = arith.constant 0 : i32
    %2 = arith.cmpi ne, %1, %c0_i32_0 : i32
    scf.if %2 {
      %cst_16 = arith.constant 0.000000e+00 : f32
      %18 = vector.broadcast %cst_16 : f32 to vector<1x128xf32>
      %c0_17 = arith.constant 0 : index
      %c0_18 = arith.constant 0 : index
      %19 = vector.load %arg4[%c0_17, %c0_18] : memref<1x128xf32, #tpu.memory_space<vmem>>, vector<1x128xf32>
      tpu.vector_store %arg4[%c0_17, %c0_18], %18 {strides = array<i32>} : memref<1x128xf32, #tpu.memory_space<vmem>>, vector<1x128xf32>,
      %cst_19 = arith.constant 0.000000e+00 : f32
      %20 = vector.broadcast %cst_19 : f32 to vector<1x128xf32>
      %c0_20 = arith.constant 0 : index
      %c0_21 = arith.constant 0 : index
      %21 = vector.load %arg5[%c0_20, %c0_21] : memref<1x128xf32, #tpu.memory_space<vmem>>, vector<1x128xf32>
      tpu.vector_store %arg5[%c0_20, %c0_21], %20 {strides = array<i32>} : memref<1x128xf32, #tpu.memory_space<vmem>>, vector<1x128xf32>,
    } else {
    }
    %c0 = arith.constant 0 : index
    %c0_1 = arith.constant 0 : index
    %3 = vector.load %arg1[%c0, %c0_1] : memref<64x128xbf16, #tpu.memory_space<vmem>>, vector<64x128xbf16>
    %c0_2 = arith.constant 0 : index
    %c0_3 = arith.constant 0 : index
    %4 = vector.load %arg2[%c0_2, %c0_3] : memref<128x128xbf16, #tpu.memory_space<vmem>>, vector<128x128xbf16>
    %cst = arith.constant dense<0.000000e+00> : vector<64x128xf32>
    %5 = tpu.matmul %3, %4, %cst {dimension_numbers = #tpu.dot_dimension_numbers<[1], [0], [0], [1], [0, 0, 1, 1], [], []>} : vector<64x128xbf16>, vector<128x128xbf16>, vector<64x128xf32> -> vector<64x128xf32>
    %c0_4 = arith.constant 0 : index
    %c0_5 = arith.constant 0 : index
    %6 = vector.load %arg3[%c0_4, %c0_5] : memref<64x128xf32, #tpu.memory_space<vmem>>, vector<64x128xf32>
    tpu.vector_store %arg3[%c0_4, %c0_5], %5 {strides = array<i32>} : memref<64x128xf32, #tpu.memory_space<vmem>>, vector<64x128xf32>,
    %c0_6 = arith.constant 0 : index
    %c0_7 = arith.constant 0 : index
    %7 = vector.load %arg4[%c0_6, %c0_7] : memref<1x128xf32, #tpu.memory_space<vmem>>, vector<1x128xf32>
    %cst_8 = arith.constant dense<0.000000e+00> : vector<128xf32>
    %8 = vector.multi_reduction <add>, %5, %cst_8 [0] : vector<64x128xf32> to vector<128xf32>
    %9 = vector.shape_cast %8 : vector<128xf32> to vector<1x128xf32>
    %10 = arith.addf %7, %9 : vector<1x128xf32>
    %c0_9 = arith.constant 0 : index
    %c0_10 = arith.constant 0 : index
    %11 = vector.load %arg4[%c0_9, %c0_10] : memref<1x128xf32, #tpu.memory_space<vmem>>, vector<1x128xf32>
    tpu.vector_store %arg4[%c0_9, %c0_10], %10 {strides = array<i32>} : memref<1x128xf32, #tpu.memory_space<vmem>>, vector<1x128xf32>,
    %c0_11 = arith.constant 0 : index
    %c0_12 = arith.constant 0 : index
    %12 = vector.load %arg5[%c0_11, %c0_12] : memref<1x128xf32, #tpu.memory_space<vmem>>, vector<1x128xf32>
    %13 = arith.mulf %5, %5 : vector<64x128xf32>
    %cst_13 = arith.constant dense<0.000000e+00> : vector<128xf32>
    %14 = vector.multi_reduction <add>, %13, %cst_13 [0] : vector<64x128xf32> to vector<128xf32>
    %15 = vector.shape_cast %14 : vector<128xf32> to vector<1x128xf32>
    %16 = arith.addf %12, %15 : vector<1x128xf32>
    %c0_14 = arith.constant 0 : index
    %c0_15 = arith.constant 0 : index
    %17 = vector.load %arg5[%c0_14, %c0_15] : memref<1x128xf32, #tpu.memory_space<vmem>>, vector<1x128xf32>
    tpu.vector_store %arg5[%c0_14, %c0_15], %16 {strides = array<i32>} : memref<1x128xf32, #tpu.memory_space<vmem>>, vector<1x128xf32>,
    return
  }
  func.func @transform_0(%arg0: i32) -> (i32, i32) {
    %c0_i32 = arith.constant 0 : i32
    %c0_i32_0 = arith.constant 0 : i32
    return %arg0, %c0_i32 : i32, i32
  }
  func.func @transform_1(%arg0: i32) -> (i32, i32) {
    %c0_i32 = arith.constant 0 : i32
    %c0_i32_0 = arith.constant 0 : i32
    %c0_i32_1 = arith.constant 0 : i32
    return %c0_i32, %c0_i32_0 : i32, i32
  }
  func.func @transform_2(%arg0: i32) -> (i32, i32) {
    %c0_i32 = arith.constant 0 : i32
    %c0_i32_0 = arith.constant 0 : i32
    return %arg0, %c0_i32 : i32, i32
  }
  func.func @transform_3(%arg0: i32) -> (i32, i32) {
    %c0_i32 = arith.constant 0 : i32
    %c0_i32_0 = arith.constant 0 : i32
    %c0_i32_1 = arith.constant 0 : i32
    return %c0_i32, %c0_i32_0 : i32, i32
  }
  func.func @transform_4(%arg0: i32) -> (i32, i32) {
    %c0_i32 = arith.constant 0 : i32
    %c0_i32_0 = arith.constant 0 : i32
    %c0_i32_1 = arith.constant 0 : i32
    return %c0_i32, %c0_i32_0 : i32, i32
  }
}

</mosaic_0001>

<bundles_post_ra>
// kernel: tpu_custom_call.1
= control target key start
LH: loop header
LB: loop body
LE: loop exit
PB: predicated region body
PF: predicated region fallthrough
CT: control target
= control target key end

     0   :  { %10 = vsyncpa [#allocation3], 0  ;;  %s1257_s0 = inlined_call_operand.hbm [shape: bf16[128,128], index: 0, kind: input, shape index: {}]   ;;  %s1258_s1 = inlined_call_operand.hbm [shape: bf16[128,128], index: 1, kind: input, shape index: {}]   ;;  %s1259_s2 = inlined_call_operand.hbm [shape: f32[128,128], index: 2, kind: output, shape index: {0}]   ;;  %s1260_s3 = inlined_call_operand.hbm [shape: f32[1,128], index: 3, kind: output, shape index: {1}]   ;;  %s1261_s4 = inlined_call_operand.hbm [shape: f32[1,128], index: 4, kind: output, shape index: {2}]  }
   0x1   :  { %12 = vsyncpa [#allocation3 + $0x1], 0 }
   0x2   :  { %13 = vsyncpa [#allocation6], 0 }
   0x3   :  { %14 = vsyncpa [#allocation4], 0 }
   0x4   :  { %16 = vsyncpa [#allocation4 + $0x1], 0 }
   0x5   :  { %17 = vsyncpa [#allocation9], 0  ;;  %s981_s15 = smov 0   ;;  %s983_s16 = smov 0  }
   0x6   :  { %s985_s17 = smov 0   ;;  %s987_s18 = smov 0  }
   0x7 LB: > { %s1002_s19 = sadd.s32 4294967295, %s944_s18   ;;  %s585_s20 = sadd.s32 4294967294, %s944_s18   ;;  %s944_s18 = sphi %s987_s18, %s1289_s18   ;;  %s940_s17 = sphi %s985_s17, %s1288_s17   ;;  %s936_s16 = sphi %s983_s16, %s1287_s16   ;;  %s932_s15 = sphi %s981_s15, %s1286_s15  }
   0x8   : > { %p43_p0 = scmp.ne.s32.totalorder %s936_s16, %s932_s15  ;;  %p1262_p1 = scmp.eq.s32.totalorder %s1002_s19, 0 }
   0x9   : > { %p94_p3 = scmp.eq.s32.totalorder %s585_s20, 1  ;;  %p586_p5 = scmp.ge.s32.totalorder %s944_s18, 1 }
   0xa   : > { %p1011_p4 = por %p1262_p1, %p43_p0  ;;  %p143_p7 = scmp.lt.s32.totalorder %s944_s18, 3 }
   0xb   : > { %p1016_p6 = por %p94_p3, %p43_p0  ;;  %s946_s24 = smov [#allocation5]  }
   0xc   : > { %s1265_s21 = scalar_select %p1011_p4, 1, 0 }
   0xd   : > { %s1266_s22 = scalar_select %p1016_p6, 1, 0 }
   0xe   : > { %p1022_p9 = pnand %p586_p5, %p143_p7  ;;  %s155_s25 = sshll.u32 %s946_s24, 4  ;;  %s1026_s25 = int_to_ptr.vmem [resolvable:$true] %s155_s25 }
   0xf   : > { %s1038_s27 = sadd.s32 1, %s944_s18   ;;  %s30_s28 = sadd.s32 1, %s940_s17 }
  0x10   : > { %s1267_s23 = scalar_select %p1022_p9, 1, 0 }
  0x11   : > { %p688_p10 = pneg %p1022_p9  ;;  %s27_s29 = ssub.s32 %s944_s18, %s1038_s27 }
  0x12   : > { %s760_s6 = scalar_lea.hbm %s1258_s1, 1024 }
  0x13   : > { %p1033_p12 = pnand %p688_p10, %p1262_p1  ;;  %p761_p13 = scmp.ne.s32.totalorder %s1258_s1, %s760_s6 }
  0x14   : > { %p767_p7 = scmp.lt.u32.totalorder %s760_s6, %s1258_s1 }
  0x15   : > { %p762_p0 = pneg %p1033_p12 }
  0x17   : > { %p763_p3 = pnand %p762_p0, %p761_p13 }
  0x19   : > { %p764_p5 = pneg %p763_p3 }
  0x1b   : > { %p769_p10 = pnand %p767_p7, %p764_p5 }
  0x1d   : > { %772 = shalt.err (!%p769_p10)
}
  0x1e   : > { %s773_s11 = scalar_lea.vmem %s1026_s25, 1024  ;;  %p781_p2 = scmp.lt.s32.totalorder %s1026_s25, %s1026_s25 }
  0x1f   : > { %p774_p11 = scmp.ne.s32.totalorder %s1026_s25, %s773_s11  ;;  %p782_p6 = scmp.lt.s32.totalorder %s773_s11, %s773_s11 }
  0x21   : > { %p776_p8 = pnand %p774_p11, %p762_p0  ;;  %p783_p4 = por %p782_p6, %p781_p2 }
  0x23   : > { %p777_p1 = pneg %p776_p8 }
  0x25   : > { %p784_p9 = pnand %p783_p4, %p777_p1 }
  0x27   : > { %787 = shalt.err (!%p784_p9)
}
  0x28   : > { %s947_s12 = smov 64   ;;  %s948_s13 = smov 4  }
  0x29   : > { %691 = dma.hbm_to_vmem [thread:$0]  (!%p1033_p12), %s1258_s1, 1024, %s1026_s25, [#allocation6], %s947_s12, %s947_s12, %s948_s13  }
  0x2a   : > { %p28_p1 = scmp.eq.s32.totalorder %s27_s29, 0  ;;  %p37_p2 = scmp.ne.s32.totalorder %s940_s17, %s936_s16 }
  0x2b   : > { %p38_p4 = scmp.eq.s32.totalorder %s944_s18, 0  ;;  %p701_p6 = scmp.lt.s32.totalorder %s944_s18, 2 }
  0x2c   : > { %s1072_s24 = scalar_select %p28_p1, %s940_s17, %s30_s28  }
  0x2d   : > { %p39_p8 = por %p38_p4, %p37_p2  ;;  %p1269_p9 = scmp.eq.s32.totalorder %s1002_s19, 1 }
  0x2e   : > { %s169_s26 = sand.u32 1, %s940_s17   ;;  %s618_s5 = sshll.u32 %s944_s18, 9 }
  0x2f   : > { %p1076_p11 = por %p1269_p9, %p37_p2  ;;  %s589_s6 = sshll.u32 %s169_s26, 5 }
  0x30   : > { %s1085_s9 = scalar_lea.hbm %s1257_s0, %s618_s5  ;;  %s173_s25 = scalar_lea.vmem [#allocation2], %s589_s6 }
  0x31   : > { %s180_s28 = sshll.u32 %s173_s25, 4  ;;  %p1087_p12 = pnand %p701_p6, %p39_p8  ;;  %s1091_s28 = int_to_ptr.vmem [resolvable:$true] %s180_s28 }
  0x32   : > { %s1093_s10 = scalar_lea.sflag [#allocation3], %s169_s26  ;;  %s788_s11 = scalar_lea.hbm %s1085_s9, 512 }
  0x33   : > { %p789_p13 = scmp.ne.s32.totalorder %s1085_s9, %s788_s11  ;;  %p790_p0 = pneg %p1087_p12 }
  0x34   : > { %s793_s5 = scalar_lea.hbm %s1257_s0, 1024  ;;  %p794_p7 = scmp.lt.u32.totalorder %s1085_s9, %s1257_s0 }
  0x35   : > { %p791_p3 = pnand %p790_p0, %p789_p13  ;;  %p795_p10 = scmp.lt.u32.totalorder %s793_s5, %s788_s11 }
  0x36   : > { %p797_p2 = scmp.lt.u32.totalorder %s788_s11, %s1085_s9 }
  0x37   : > { %p792_p5 = pneg %p791_p3  ;;  %p796_p1 = por %p795_p10, %p794_p7 }
  0x39   : > { %p798_p4 = por %p797_p2, %p796_p1 }
  0x3b   : > { %p799_p6 = pnand %p798_p4, %p792_p5 }
  0x3d   : > { %802 = shalt.err (!%p799_p6)
}
  0x3e   : > { %s803_s26 = scalar_lea.vmem %s1091_s28, 512  ;;  %s949_s8 = smov [#allocation2]  }
  0x3f   : > { %p804_p8 = scmp.ne.s32.totalorder %s1091_s28, %s803_s26  ;;  %s808_s25 = sshll.u32 %s949_s8, 4  ;;  %s809_s25 = int_to_ptr.vmem [resolvable:$false] %s808_s25 }
  0x40   : > { %s810_s14 = scalar_lea.vmem %s809_s25, 1024  ;;  %p811_p3 = scmp.lt.s32.totalorder %s1091_s28, %s809_s25 }
  0x41   : > { %p806_p9 = pnand %p804_p8, %p790_p0  ;;  %p812_p7 = scmp.lt.s32.totalorder %s810_s14, %s803_s26 }
  0x43   : > { %p807_p13 = pneg %p806_p9  ;;  %p813_p10 = por %p812_p7, %p811_p3 }
  0x45   : > { %p814_p1 = pnand %p813_p10, %p807_p13 }
  0x47   : > { %817 = shalt.err (!%p814_p1)
}
  0x48   : > { %695 = dma.hbm_to_vmem [thread:$0]  (!%p1087_p12), %s1085_s9, 512, %s1091_s28, %s1093_s10, %s947_s12, %s947_s12, %s948_s13  }
  0x49   : > { %p1272_p0 = scmp.ne.s32.totalorder %s1267_s23, 0 }
  0x4a   : > { %s1127_s11 = sand.u32 (!%p1272_p0), 1, %s936_s16   ;;  %p1273_p5 = scmp.ne.s32.totalorder (!%p1272_p0), %s1265_s21, 0 }
  0x4b   : > { %192 = sbr.rel (%p1272_p0) target bundleno = 421 (0x1a5), region = 28  ;;  %s593_s20 = sshll.u32 (!%p1272_p0), %s1127_s11, 5 }
  0x4c   : > { %s195_s5 = scalar_lea.sflag (!%p1272_p0), [#allocation3], %s1127_s11  ;;  %s1131_s6 = scalar_lea.vmem (!%p1272_p0), [#allocation2], %s593_s20 }
  0x52   : > { %915 = dma.done.wait (%p1273_p5), %s195_s5, 512  }
  0x53   : > { %917 = vsyncadd (%p1273_p5), %s195_s5, 4294966784  ;;  %p1274_p12 = scmp.eq.s32.totalorder %s1002_s19, 0 }
  0x55   : > { %919 = dma.done.wait (%p1274_p12), [#allocation6], 1024   ;;  %p1275_p2 = pmov %p1274_p12 }
  0x56   : > { %s595_s23 = sshll.u32 %s1127_s11, 6  ;;  %p1276_p4 = scmp.ne.s32.totalorder %s1002_s19, 0 }
  0x57   : > { %921 = vsyncadd (%p1275_p2), [#allocation6], 4294966272  ;;  %s1142_s12 = scalar_lea.vmem [#allocation7], %s595_s23  ;;  %v950_v0 = vmov (!%p1276_p4), 0.0  }
  0x58   : > { %233 = sbr.rel (%p1276_p4) target bundleno = 95 (0x5f), region = 40  ;;  %234 = vst [vmem:[#allocation8] sm:$0x1] (!%p1276_p4), %v950_v0  ;;  %235 = vst [vmem:[#allocation10] sm:$0x1] (!%p1276_p4), %v950_v0 }
  0x5f PF: > { %v748_v1 = vld [vmem:[#allocation5] sm:$0xff]   ;;  %v749_v2 = vld [vmem:[#allocation5 + $0x8] sm:$0xff]   ;;  %v750_v3 = vld [vmem:[#allocation5 + $0x10] sm:$0xff]   ;;  %s619_s21 = sshll.u32 %s1002_s19, 10  ;;  %s459_s13 = sshll.u32 %s1142_s12, 4  ;;  %s1159_s13 = int_to_ptr.vmem [resolvable:$true] %s459_s13 }
  0x60   : > { %632 = vmatprep.subr.bf16.mxu0 %v748_v1  ;;  %656 = vmatprep.subr.bf16.mxu1 %v748_v1  ;;  %v751_v4 = vld [vmem:[#allocation5 + $0x18] sm:$0xff]   ;;  %v756_v5 = vld [vmem:[%s1131_s6] sm:$0xff]   ;;  %v758_v6 = vld [vmem:[%s1131_s6 + $0x10] sm:$0xff]   ;;  %s1157_s29 = scalar_lea.hbm %s1259_s2, %s619_s21  ;;  %s446_s10 = scalar_lea.sflag [#allocation4], %s1127_s11 }
  0x61   : > { %633 = vmatpush3.bf16.msra.mxu0 %v748_v1  ;;  %664 = vmatpush3.bf16.msra.mxu1 %v748_v1  ;;  %v752_v7 = vld [vmem:[#allocation5 + $0x20] sm:$0xff]   ;;  %v753_v8 = vld [vmem:[#allocation5 + $0x28] sm:$0xff]   ;;  %v754_v9 = vld [vmem:[#allocation5 + $0x30] sm:$0xff]   ;;  %s818_s7 = scalar_lea.vmem %s1159_s13, 1024  ;;  %s951_s26 = smov [#allocation7]  }
  0x62   : > { %634 = vmatprep.subr.bf16.mxu0 %v749_v2  ;;  %657 = vmatprep.subr.bf16.mxu1 %v749_v2  ;;  %v755_v10 = vld [vmem:[#allocation5 + $0x38] sm:$0xff]   ;;  %v757_v11 = vld [vmem:[%s1131_s6 + $0x8] sm:$0xff]   ;;  %p819_p6 = scmp.ne.s32.totalorder %s1159_s13, %s818_s7  ;;  %s822_s8 = sshll.u32 %s951_s26, 4  ;;  %s823_s8 = int_to_ptr.vmem [resolvable:$false] %s822_s8 }
  0x63   : > { %648 = vmatprep.mubr.bf16.mxu0 %v756_v5  ;;  %652 = vmatprep.mubr.bf16.mxu1 %v758_v6  ;;  %v759_v12 = vld [vmem:[%s1131_s6 + $0x18] sm:$0xff]   ;;  %s824_s25 = scalar_lea.vmem %s823_s8, 2048  ;;  %p825_p13 = scmp.lt.s32.totalorder %s1159_s13, %s823_s8 }
  0x64   : > { %p820_p8 = pnand %p819_p6, %p1076_p11  ;;  %p826_p3 = scmp.lt.s32.totalorder %s824_s25, %s818_s7 }
  0x65   : > { %635 = vmatpush3.bf16.msra.mxu0 %v749_v2  ;;  %665 = vmatpush3.bf16.msra.mxu1 %v749_v2 }
  0x66   : > { %636 = vmatprep.subr.bf16.mxu0 %v750_v3  ;;  %658 = vmatprep.subr.bf16.mxu1 %v750_v3  ;;  %p821_p9 = pneg %p820_p8  ;;  %p827_p7 = por %p826_p3, %p825_p13 }
  0x68   : > { %p828_p10 = pnand %p827_p7, %p821_p9 }
  0x69   : > { %637 = vmatpush3.bf16.msra.mxu0 %v750_v3  ;;  %666 = vmatpush3.bf16.msra.mxu1 %v750_v3 }
  0x6a   : > { %638 = vmatprep.subr.bf16.mxu0 %v751_v4  ;;  %659 = vmatprep.subr.bf16.mxu1 %v751_v4 }
  0x6d   : > { %639 = vmatpush3.bf16.msra.mxu0 %v751_v4  ;;  %667 = vmatpush3.bf16.msra.mxu1 %v751_v4 }
  0x6e   : > { %640 = vmatprep.subr.bf16.mxu0 %v752_v7  ;;  %660 = vmatprep.subr.bf16.mxu1 %v752_v7 }
  0x71   : > { %641 = vmatpush3.bf16.msra.mxu0 %v752_v7  ;;  %668 = vmatpush3.bf16.msra.mxu1 %v752_v7 }
  0x72   : > { %642 = vmatprep.subr.bf16.mxu0 %v753_v8  ;;  %661 = vmatprep.subr.bf16.mxu1 %v753_v8 }
  0x75   : > { %643 = vmatpush3.bf16.msra.mxu0 %v753_v8  ;;  %669 = vmatpush3.bf16.msra.mxu1 %v753_v8 }
  0x76   : > { %644 = vmatprep.subr.bf16.mxu0 %v754_v9  ;;  %662 = vmatprep.subr.bf16.mxu1 %v754_v9 }
  0x79   : > { %645 = vmatpush3.bf16.msra.mxu0 %v754_v9  ;;  %670 = vmatpush3.bf16.msra.mxu1 %v754_v9 }
  0x7a   : > { %646 = vmatprep.subr.bf16.mxu0 %v755_v10  ;;  %663 = vmatprep.subr.bf16.mxu1 %v755_v10 }
  0x7d   : > { %647 = vmatpush3.bf16.msra.mxu0 %v755_v10  ;;  %671 = vmatpush3.bf16.msra.mxu1 %v755_v10 }
  0x80   : > { %649 = vmatmul.mubr.bf16.vlgmr.msra.gmra.mrb[0].mxu0 %v757_v11  ;;  %653 = vmatmul.mubr.bf16.vlgmr.msra.gmra.mrb[0].mxu1 %v759_v12 }
 0x153   : > { %v650_v13 = vpop.f32.mrb[0].mxu0  ;;  %v654_v14 = vpop.f32.mrb[0].mxu1 }
 0x154   : > { %399 = vst [vmem:[%s1142_s12 + $0x10] sm:$0xff] %v650_v13  ;;  %v366_v15 = vpop.f32.mrb[1].mxu0  ;;  %403 = vst [vmem:[%s1142_s12 + $0x30] sm:$0xff] %v654_v14  ;;  %v382_v16 = vpop.f32.mrb[1].mxu1 }
 0x155   : > { %397 = vst [vmem:[%s1142_s12] sm:$0xff] %v366_v15  ;;  %v651_v17 = vpop.f32.mrb[2].mxu0  ;;  %401 = vst [vmem:[%s1142_s12 + $0x20] sm:$0xff] %v382_v16  ;;  %v655_v18 = vpop.f32.mrb[2].mxu1  ;;  %v422_v21 = vmul.f32 %v366_v15, %v366_v15 }
 0x156   : > { %400 = vst [vmem:[%s1142_s12 + $0x18] sm:$0xff] %v651_v17  ;;  %v369_v19 = vpop.f32.mrb[3].mxu0  ;;  %404 = vst [vmem:[%s1142_s12 + $0x38] sm:$0xff] %v655_v18  ;;  %v385_v20 = vpop.f32.mrb[3].mxu1 }
 0x157   : > { %398 = vst [vmem:[%s1142_s12 + $0x8] sm:$0xff] %v369_v19  ;;  %v406_v22 = vadd.f32 %v369_v19, %v366_v15  ;;  %v423_v23 = vmul.f32 %v369_v19, %v369_v19  ;;  %402 = vst [vmem:[%s1142_s12 + $0x28] sm:$0xff] %v385_v20 }
 0x158   : > { %831 = shalt.err (!%p828_p10)
}
 0x159   : > { %s832_s14 = scalar_lea.hbm %s1157_s29, 1024  ;;  %s836_s6 = scalar_lea.hbm %s1259_s2, 2048 }
 0x15a   : > { %p833_p1 = scmp.ne.s32.totalorder %s1157_s29, %s832_s14  ;;  %p837_p12 = scmp.lt.u32.totalorder %s1157_s29, %s1259_s2 }
 0x15b   : > { %p838_p2 = scmp.lt.u32.totalorder %s836_s6, %s832_s14  ;;  %p840_p6 = scmp.lt.u32.totalorder %s832_s14, %s1157_s29 }
 0x15c   : > { %p834_p0 = pnand %p833_p1, %p1076_p11 }
 0x15d   : > { %p839_p4 = por %p838_p2, %p837_p12 }
 0x15e   : > { %p835_p5 = pneg %p834_p0 }
 0x15f   : > { %p841_p8 = por %p840_p6, %p839_p4 }
 0x161   : > { %p842_p9 = pnand %p841_p8, %p835_p5 }
 0x163   : > { %845 = shalt.err (!%p842_p9)
}
 0x164   : > { %s952_s21 = smov 128   ;;  %s953_s9 = smov 8   ;;  %v424_v24 = vmul.f32 %v650_v13, %v650_v13  ;;  %v407_v25 = vadd.f32 %v650_v13, %v406_v22  ;;  %v430_v26 = vadd.f32 %v423_v23, %v422_v21  ;;  %v425_v27 = vmul.f32 %v651_v17, %v651_v17  ;;  %v405_v52 = vld [vmem:[#allocation8] sm:$0x1]  ;;  %v421_v55 = vld [vmem:[#allocation10] sm:$0x1] }
 0x165   : > { %678 = dma.vmem_to_hbm [thread:$0]  (%p1076_p11), %s1159_s13, 1024, %s1157_s29, %s446_s10, %s952_s21, %s952_s21, %s953_s9   ;;  %v426_v30 = vmul.f32 %v382_v16, %v382_v16  ;;  %v427_v35 = vmul.f32 %v385_v20, %v385_v20  ;;  %v428_v36 = vmul.f32 %v654_v14, %v654_v14  ;;  %v429_v39 = vmul.f32 %v655_v18, %v655_v18 }
 0x166   : > { %v431_v28 = vadd.f32 %v430_v26, %v424_v24  ;;  %v408_v29 = vadd.f32 %v651_v17, %v407_v25  ;;  %s954_s30 = smov [#allocation8]   ;;  %s955_s13 = smov [#allocation10]  }
 0x167   : > { %s473_s11 = sshll.u32 %s954_s30, 4  ;;  %s484_s28 = sshll.u32 %s955_s13, 4  ;;  %s474_s11 = int_to_ptr.vmem [resolvable:$true] %s473_s11  ;;  %s1191_s28 = int_to_ptr.vmem [resolvable:$true] %s484_s28 }
 0x168   : > { %v409_v31 = vadd.f32 %v408_v29, %v382_v16  ;;  %v432_v32 = vadd.f32 %v431_v28, %v425_v27  ;;  %s846_s29 = scalar_lea.vmem %s474_s11, 16  ;;  %p1277_p13 = scmp.eq.s32.totalorder %s1002_s19, 1 }
 0x169   : > { %p847_p11 = scmp.ne.s32.totalorder %s474_s11, %s846_s29  ;;  %s852_s10 = scalar_lea.vmem %s474_s11, 32 }
 0x16a   : > { %v433_v33 = vadd.f32 %v432_v32, %v426_v30  ;;  %v410_v34 = vadd.f32 %v409_v31, %v385_v20  ;;  %p853_p10 = scmp.lt.s32.totalorder %s474_s11, %s474_s11  ;;  %p854_p1 = scmp.lt.s32.totalorder %s852_s10, %s846_s29 }
 0x16b   : > { %p848_p3 = pnand %p847_p11, %p1277_p13 }
 0x16c   : > { %v411_v37 = vadd.f32 %v654_v14, %v410_v34  ;;  %v434_v38 = vadd.f32 %v433_v33, %v427_v35  ;;  %p855_p0 = por %p854_p1, %p853_p10 }
 0x16d   : > { %p849_p7 = pneg %p848_p3 }
 0x16e   : > { %v412_v40 = vadd.f32 %v655_v18, %v411_v37  ;;  %v435_v41 = vadd.f32 %v434_v38, %v428_v36 }
 0x16f   : > { %p856_p5 = pnand %p855_p0, %p849_p7 }
 0x170   : > { %v413_v42 = vrot.slane %v412_v40, 4  ;;  %v436_v43 = vadd.f32 %v435_v41, %v429_v39 }
 0x172   : > { %v414_v44 = vadd.f32 %v413_v42, %v412_v40  ;;  %v437_v45 = vrot.slane %v436_v43, 4 }
 0x174   : > { %v415_v46 = vrot.slane %v414_v44, 2  ;;  %v438_v47 = vadd.f32 %v437_v45, %v436_v43 }
 0x176   : > { %v416_v48 = vadd.f32 %v415_v46, %v414_v44  ;;  %v439_v49 = vrot.slane %v438_v47, 2 }
 0x178   : > { %v417_v50 = vrot.slane %v416_v48, 1  ;;  %v440_v51 = vadd.f32 %v439_v49, %v438_v47 }
 0x17a   : > { %v418_v53 = vadd.f32 %v417_v50, %v416_v48  ;;  %v441_v54 = vrot.slane %v440_v51, 1 }
 0x17c   : > { %v419_v56 = vadd.f32 %v418_v53, %v405_v52  ;;  %v442_v57 = vadd.f32 %v441_v54, %v440_v51 }
 0x17e   : > { %420 = vst [vmem:[#allocation8] sm:$0x1] %v419_v56  ;;  %v443_v58 = vadd.f32 %v442_v57, %v421_v55 }
 0x17f   : > { %859 = shalt.err (!%p856_p5)
}
 0x180   : > { %s860_s8 = scalar_lea.hbm %s1260_s3, 16  ;;  %p1278_p2 = pmov %p1277_p13 }
 0x181   : > { %p861_p12 = scmp.ne.s32.totalorder %s1260_s3, %s860_s8  ;;  %p866_p8 = scmp.lt.u32.totalorder %s860_s8, %s1260_s3 }
 0x183   : > { %p862_p4 = pnand %p861_p12, %p1278_p2 }
 0x185   : > { %p863_p6 = pneg %p862_p4 }
 0x187   : > { %p868_p9 = pnand %p866_p8, %p863_p6 }
 0x189   : > { %871 = shalt.err (!%p868_p9)
}
 0x18a   : > { %p1279_p11 = pmov %p1278_p2  ;;  %444 = vst [vmem:[#allocation10] sm:$0x1] %v443_v58  ;;  %s872_s12 = scalar_lea.vmem %s1191_s28, 16 }
 0x18b   : > { %p873_p13 = scmp.ne.s32.totalorder %s1191_s28, %s872_s12  ;;  %p1280_p3 = pmov %p1278_p2 }
 0x18c   : > { %680 = dma.vmem_to_hbm [thread:$0]  (%p1279_p11), %s474_s11, 16, %s1260_s3, [#allocation9]  }
 0x18d   : > { %p874_p7 = pnand %p873_p13, %p1280_p3  ;;  %s878_s21 = scalar_lea.vmem %s1191_s28, 32 }
 0x18e   : > { %p879_p1 = scmp.lt.s32.totalorder %s1191_s28, %s1191_s28  ;;  %p880_p0 = scmp.lt.s32.totalorder %s878_s21, %s872_s12 }
 0x18f   : > { %p875_p10 = pneg %p874_p7 }
 0x190   : > { %p881_p5 = por %p880_p0, %p879_p1 }
 0x192   : > { %p882_p12 = pnand %p881_p5, %p875_p10 }
 0x194   : > { %885 = shalt.err (!%p882_p12)
}
 0x195   : > { %s886_s13 = scalar_lea.hbm %s1261_s4, 16  ;;  %p1281_p4 = pmov %p1280_p3 }
 0x196   : > { %p887_p2 = scmp.ne.s32.totalorder %s1261_s4, %s886_s13  ;;  %p892_p9 = scmp.lt.u32.totalorder %s886_s13, %s1261_s4 }
 0x198   : > { %p888_p6 = pnand %p887_p2, %p1281_p4 }
 0x19a   : > { %p889_p8 = pneg %p888_p6 }
 0x19c   : > { %p894_p11 = pnand %p892_p9, %p889_p8 }
 0x19e   : > { %897 = shalt.err (!%p894_p11)
}
 0x19f   : > { %p1282_p13 = pmov %p1280_p3 }
 0x1a1   : > { %682 = dma.vmem_to_hbm [thread:$0]  (%p1282_p13), %s1191_s28, 16, %s1261_s4, [#allocation9]  }
 0x1a2   : > { %923 = dma.done.wait (%p1280_p3), [#allocation9], 32   ;;  %p1283_p7 = pmov %p1280_p3 }
 0x1a4   : > { %925 = vsyncadd (%p1283_p7), [#allocation9], 4294967264 }
 0x1a5 PF: > { %s504_s25 = sand.u32 1, %s932_s15   ;;  %p1284_p10 = scmp.ne.s32.totalorder %s1266_s22, 0 }
 0x1a6   : > { %p1285_p1 = scmp.ge.s32.totalorder %s944_s18, 2  ;;  %s505_s14 = scalar_lea.sflag [#allocation4], %s504_s25 }
 0x1a8   : > { %p697_p0 = pnand %p1285_p1, %p1284_p10 }
 0x1aa   : > { %927 = dma.done.wait (!%p697_p0), %s505_s14, 1024  }
 0x1ab   : > { %929 = vsyncadd (!%p697_p0), %s505_s14, 4294966272  ;;  %p20_p5 = scmp.ge.s32.totalorder %s1038_s27, 4   ;;  %s1286_s15 = smov %s936_s16 }
 0x1ac   : > { %s1287_s16 = smov %s940_s17  ;;  %s1288_s17 = smov %s1072_s24 }
 0x1ad   : > { %s1289_s18 = smov %s1038_s27  ;;  %22 = sbr.rel (!%p20_p5) target bundleno = 7 (0x7), region = 97 }
 0x1b4   :  { %510 = vsyncpa [#allocation3], 1 }
 0x1b5   :  { %512 = vsyncpa [#allocation3 + $0x1], 1 }
 0x1b6   :  { %513 = vsyncpa [#allocation6], 1 }
 0x1b7   :  { %514 = vsyncpa [#allocation4], 1 }
 0x1b8   :  { %516 = vsyncpa [#allocation4 + $0x1], 1 }
 0x1b9   :  { %517 = vsyncpa [#allocation9], 1 }

</bundles_post_ra>
